<compile_context>
chip_gen: v7x
topology: tpu7x:2x2x1
jax: 0.10.0
libtpu: 0.0.40
codegen_flags: <defaults>
</compile_context>

<pallas_src>
import jax
import jax.numpy as jnp
from jax.experimental import pallas as pl
from jax.experimental.pallas import tpu as pltpu

N_IN, N_HID, N_OUT = 4, 10, 2
LANE = 128                # TPU vreg lane width
MAX_BATCH_TILE = 131072   # lanes per batch tile; ~48 B/lane of double-buffered VMEM = 6 MiB,
                          # safely under the 16/32/32 MiB scoped defaults on v5e/v6e/v7x.

# Folded-parameter layout (float32, lives in SMEM inside the kernel):
#   params[5*j + k] = W1[j, k]          k = 0..3, j = 0..9
#   params[5*j + 4] = b1[j]
#   params[50 + j]  = W2[0, j] - W2[1, j]
#   params[60]      = b2[0]   - b2[1]
_P_WD = N_HID * (N_IN + 1)      # 50
_P_BD = _P_WD + N_HID           # 60
N_PARAMS = _P_BD + 1            # 61


def _policy_kernel(params_ref, x_ref, o_ref):
    # params_ref: [61] f32 in SMEM  (scalar-splat weights; no VMEM weight operands)
    # x_ref     : [4, R, 128] f32   per-feature planes, batch dense on (sublane, lane)
    # o_ref     : [2, R, 128] f32   per-class probability planes
    x0 = x_ref[0]
    x1 = x_ref[1]
    x2 = x_ref[2]
    x3 = x_ref[3]

    # d = (W2[0]-W2[1]) . relu(W1 x + b1) + (b2[0]-b2[1]), built from scalar-weight VPU
    # FMAs over fully dense planes.  No MXU, no XLU reductions, no sublane broadcasts.
    d = jnp.zeros_like(x0)
    for j in range(N_HID):                      # static unroll, 10 hidden units
        base = j * (N_IN + 1)
        h = (params_ref[base + 0] * x0
             + params_ref[base + 1] * x1
             + params_ref[base + 2] * x2
             + params_ref[base + 3] * x3
             + params_ref[base + 4])            # bias (scalar splat)
        h = jnp.maximum(h, 0.0)                 # ReLU
        d = d + params_ref[_P_WD + j] * h
    d = d + params_ref[_P_BD]

    # 2-class softmax == sigmoid of the logit difference (exp/div on the EUP/VPU).
    p0 = 1.0 / (1.0 + jnp.exp(-d))
    o_ref[0] = p0                               # direct plane stores, lane-dense
    o_ref[1] = 1.0 - p0


def fold_params(w1, b1, w2, b2):
    """Fold PyTorch-layout Linear params (weight [out,in], bias [out]) into one [61] vector.

    Do this once per policy update; it is reused across every forward call.
    """
    w1b1 = jnp.concatenate([w1, b1[:, None]], axis=1).reshape(-1)   # [50]
    wdiff = (w2[0] - w2[1]).reshape(-1)                             # [10]
    bdiff = (b2[0] - b2[1]).reshape(1)                              # [1]
    return jnp.concatenate([w1b1, wdiff, bdiff]).astype(jnp.float32)


def policy_probs_fm(x_fm, params, *, core_parallel=False):
    """Feature-major policy forward: x_fm [4, B] f32 -> probabilities [2, B] f32.

    This is the production entry point: no transposes, no host-side relayout.  Set
    core_parallel=True on TPU v7x to shard batch tiles across both TensorCores.
    """
    n_in, B = x_fm.shape
    assert n_in == N_IN and params.shape == (N_PARAMS,)

    # Round the batch up so it tiles exactly (no partial blocks anywhere).
    b_pad = max(LANE, -(-B // LANE) * LANE)
    tb = min(MAX_BATCH_TILE, b_pad)
    num_tiles = -(-b_pad // tb)
    b_pad = num_tiles * tb
    x_fm = x_fm.astype(jnp.float32)
    if b_pad != B:
        x_fm = jnp.pad(x_fm, ((0, 0), (0, b_pad - B)))

    r = tb // LANE
    # Free row-major reshape: each feature row becomes a dense [B/128, 128] plane.
    x_planes = x_fm.reshape(N_IN, b_pad // LANE, LANE)

    dim_sem = (pltpu.CORE_PARALLEL,) if core_parallel else ("parallel",)

    probs_planes = pl.pallas_call(
        _policy_kernel,
        out_shape=jax.ShapeDtypeStruct((N_OUT, b_pad // LANE, LANE), jnp.float32),
        grid=(num_tiles,),
        in_specs=[
            pl.BlockSpec(memory_space=pltpu.MemorySpace.SMEM),      # folded weights (61 f32)
            pl.BlockSpec((N_IN, r, LANE), lambda i: (0, i, 0)),     # batch tile of x planes
        ],
        out_specs=pl.BlockSpec((N_OUT, r, LANE), lambda i: (0, i, 0)),
        compiler_params=pltpu.CompilerParams(dimension_semantics=dim_sem),
    )(params, x_planes)

    probs = probs_planes.reshape(N_OUT, b_pad)                      # free reshape
    return probs if b_pad == B else probs[:, :B]


def policy_forward(x, params, *, core_parallel=False):
    """PyTorch-layout compatibility wrapper: x [B, 4] -> probabilities [B, 2].

    The transposes here exist only for nn.Module API parity; rollout code should store
    observations feature-major and call `policy_probs_fm` directly (zero relayout).
    """
    return policy_probs_fm(x.T, params, core_parallel=core_parallel).T


def _reference(x, w1, b1, w2, b2):
    h = jnp.maximum(x @ w1.T + b1, 0.0)
    return jax.nn.softmax(h @ w2.T + b2, axis=1)


if __name__ == "__main__":
    k1, k2, k3, k4, kx = jax.random.split(jax.random.PRNGKey(0), 5)
    # Deterministic synthetic parameters in PyTorch nn.Linear shapes.
    w1 = jax.random.uniform(k1, (10, 4), jnp.float32, -0.5, 0.5)    # Linear(4, 10).weight
    b1 = jax.random.uniform(k2, (10,), jnp.float32, -0.5, 0.5)
    w2 = jax.random.uniform(k3, (2, 10), jnp.float32, -0.5, 0.5)    # Linear(10, 2).weight
    b2 = jax.random.uniform(k4, (2,), jnp.float32, -0.5, 0.5)
    params = fold_params(w1, b1, w2, b2)

    # Tiny RL batch (B=8) plus a non-multiple-of-128 batch to exercise lane padding.
    for B in (8, 200):
        x = jax.random.normal(jax.random.fold_in(kx, B), (B, 4), jnp.float32)
        ref = _reference(x, w1, b1, w2, b2)

        # PyTorch-layout path (module semantics: [B,4] -> [B,2]).
        out = jax.block_until_ready(policy_forward(x, params))
        assert out.shape == (B, 2)
        assert jnp.allclose(out, ref, atol=1e-5), f"mismatch vs reference at B={B}"
        assert jnp.allclose(jnp.sum(out, axis=1), 1.0, atol=1e-5), "softmax rows must sum to 1"

        # Feature-major production path (no relayout in the wrapper at all).
        out_fm = jax.block_until_ready(policy_probs_fm(jnp.asarray(x).T, params))
        assert out_fm.shape == (2, B)
        assert jnp.allclose(out_fm.T, ref, atol=1e-5), f"feature-major mismatch at B={B}"

    print("KERNEL_OK")
</pallas_src>

<mosaic_0001>
module attributes {stable_mosaic.version = 11 : i64} {
  func.func @_policy_kernel(%arg0: i32, %arg1: memref<61xf32, #tpu.memory_space<smem>>, %arg2: memref<4x1x128xf32, #tpu.memory_space<vmem>>, %arg3: memref<2x1x128xf32, #tpu.memory_space<vmem>>) attributes {dimension_semantics = [#tpu.dimension_semantics<parallel>], iteration_bounds = array<i64: 1>, scalar_prefetch = 0 : i64, scratch_operands = 0 : i64, tpu.core_type = #tpu.core_type<tc>, window_params = [{transform_indices = @transform_0, window_bounds = array<i64: 61>}, {transform_indices = @transform_1, window_bounds = array<i64: 4, 1, 128>}, {transform_indices = @transform_2, window_bounds = array<i64: 2, 1, 128>}]} {
    %c0 = arith.constant 0 : index
    %c0_0 = arith.constant 0 : index
    %c0_1 = arith.constant 0 : index
    %0 = vector.load %arg2[%c0, %c0_0, %c0_1] : memref<4x1x128xf32, #tpu.memory_space<vmem>>, vector<1x1x128xf32>
    %1 = vector.shape_cast %0 : vector<1x1x128xf32> to vector<1x128xf32>
    %c1 = arith.constant 1 : index
    %c0_2 = arith.constant 0 : index
    %c0_3 = arith.constant 0 : index
    %2 = vector.load %arg2[%c1, %c0_2, %c0_3] : memref<4x1x128xf32, #tpu.memory_space<vmem>>, vector<1x1x128xf32>
    %3 = vector.shape_cast %2 : vector<1x1x128xf32> to vector<1x128xf32>
    %c2 = arith.constant 2 : index
    %c0_4 = arith.constant 0 : index
    %c0_5 = arith.constant 0 : index
    %4 = vector.load %arg2[%c2, %c0_4, %c0_5] : memref<4x1x128xf32, #tpu.memory_space<vmem>>, vector<1x1x128xf32>
    %5 = vector.shape_cast %4 : vector<1x1x128xf32> to vector<1x128xf32>
    %c3 = arith.constant 3 : index
    %c0_6 = arith.constant 0 : index
    %c0_7 = arith.constant 0 : index
    %6 = vector.load %arg2[%c3, %c0_6, %c0_7] : memref<4x1x128xf32, #tpu.memory_space<vmem>>, vector<1x1x128xf32>
    %7 = vector.shape_cast %6 : vector<1x1x128xf32> to vector<1x128xf32>
    %cst = arith.constant 0.000000e+00 : f32
    %8 = vector.broadcast %cst : f32 to vector<1x128xf32>
    %c0_8 = arith.constant 0 : index
    %9 = memref.load %arg1[%c0_8] : memref<61xf32, #tpu.memory_space<smem>>
    %10 = vector.broadcast %9 : f32 to vector<1x128xf32>
    %11 = arith.mulf %10, %1 : vector<1x128xf32>
    %c1_9 = arith.constant 1 : index
    %12 = memref.load %arg1[%c1_9] : memref<61xf32, #tpu.memory_space<smem>>
    %13 = vector.broadcast %12 : f32 to vector<1x128xf32>
    %14 = arith.mulf %13, %3 : vector<1x128xf32>
    %15 = arith.addf %11, %14 : vector<1x128xf32>
    %c2_10 = arith.constant 2 : index
    %16 = memref.load %arg1[%c2_10] : memref<61xf32, #tpu.memory_space<smem>>
    %17 = vector.broadcast %16 : f32 to vector<1x128xf32>
    %18 = arith.mulf %17, %5 : vector<1x128xf32>
    %19 = arith.addf %15, %18 : vector<1x128xf32>
    %c3_11 = arith.constant 3 : index
    %20 = memref.load %arg1[%c3_11] : memref<61xf32, #tpu.memory_space<smem>>
    %21 = vector.broadcast %20 : f32 to vector<1x128xf32>
    %22 = arith.mulf %21, %7 : vector<1x128xf32>
    %23 = arith.addf %19, %22 : vector<1x128xf32>
    %c4 = arith.constant 4 : index
    %24 = memref.load %arg1[%c4] : memref<61xf32, #tpu.memory_space<smem>>
    %25 = vector.broadcast %24 : f32 to vector<1x128xf32>
    %26 = arith.addf %23, %25 : vector<1x128xf32>
    %cst_12 = arith.constant 0.000000e+00 : f32
    %27 = vector.broadcast %cst_12 : f32 to vector<1x128xf32>
    %28 = arith.maximumf %26, %27 : vector<1x128xf32>
    %c50 = arith.constant 50 : index
    %29 = memref.load %arg1[%c50] : memref<61xf32, #tpu.memory_space<smem>>
    %30 = vector.broadcast %29 : f32 to vector<1x128xf32>
    %31 = arith.mulf %30, %28 : vector<1x128xf32>
    %32 = arith.addf %8, %31 : vector<1x128xf32>
    %c5 = arith.constant 5 : index
    %33 = memref.load %arg1[%c5] : memref<61xf32, #tpu.memory_space<smem>>
    %34 = vector.broadcast %33 : f32 to vector<1x128xf32>
    %35 = arith.mulf %34, %1 : vector<1x128xf32>
    %c6 = arith.constant 6 : index
    %36 = memref.load %arg1[%c6] : memref<61xf32, #tpu.memory_space<smem>>
    %37 = vector.broadcast %36 : f32 to vector<1x128xf32>
    %38 = arith.mulf %37, %3 : vector<1x128xf32>
    %39 = arith.addf %35, %38 : vector<1x128xf32>
    %c7 = arith.constant 7 : index
    %40 = memref.load %arg1[%c7] : memref<61xf32, #tpu.memory_space<smem>>
    %41 = vector.broadcast %40 : f32 to vector<1x128xf32>
    %42 = arith.mulf %41, %5 : vector<1x128xf32>
    %43 = arith.addf %39, %42 : vector<1x128xf32>
    %c8 = arith.constant 8 : index
    %44 = memref.load %arg1[%c8] : memref<61xf32, #tpu.memory_space<smem>>
    %45 = vector.broadcast %44 : f32 to vector<1x128xf32>
    %46 = arith.mulf %45, %7 : vector<1x128xf32>
    %47 = arith.addf %43, %46 : vector<1x128xf32>
    %c9 = arith.constant 9 : index
    %48 = memref.load %arg1[%c9] : memref<61xf32, #tpu.memory_space<smem>>
    %49 = vector.broadcast %48 : f32 to vector<1x128xf32>
    %50 = arith.addf %47, %49 : vector<1x128xf32>
    %cst_13 = arith.constant 0.000000e+00 : f32
    %51 = vector.broadcast %cst_13 : f32 to vector<1x128xf32>
    %52 = arith.maximumf %50, %51 : vector<1x128xf32>
    %c51 = arith.constant 51 : index
    %53 = memref.load %arg1[%c51] : memref<61xf32, #tpu.memory_space<smem>>
    %54 = vector.broadcast %53 : f32 to vector<1x128xf32>
    %55 = arith.mulf %54, %52 : vector<1x128xf32>
    %56 = arith.addf %32, %55 : vector<1x128xf32>
    %c10 = arith.constant 10 : index
    %57 = memref.load %arg1[%c10] : memref<61xf32, #tpu.memory_space<smem>>
    %58 = vector.broadcast %57 : f32 to vector<1x128xf32>
    %59 = arith.mulf %58, %1 : vector<1x128xf32>
    %c11 = arith.constant 11 : index
    %60 = memref.load %arg1[%c11] : memref<61xf32, #tpu.memory_space<smem>>
    %61 = vector.broadcast %60 : f32 to vector<1x128xf32>
    %62 = arith.mulf %61, %3 : vector<1x128xf32>
    %63 = arith.addf %59, %62 : vector<1x128xf32>
    %c12 = arith.constant 12 : index
    %64 = memref.load %arg1[%c12] : memref<61xf32, #tpu.memory_space<smem>>
    %65 = vector.broadcast %64 : f32 to vector<1x128xf32>
    %66 = arith.mulf %65, %5 : vector<1x128xf32>
    %67 = arith.addf %63, %66 : vector<1x128xf32>
    %c13 = arith.constant 13 : index
    %68 = memref.load %arg1[%c13] : memref<61xf32, #tpu.memory_space<smem>>
    %69 = vector.broadcast %68 : f32 to vector<1x128xf32>
    %70 = arith.mulf %69, %7 : vector<1x128xf32>
    %71 = arith.addf %67, %70 : vector<1x128xf32>
    %c14 = arith.constant 14 : index
    %72 = memref.load %arg1[%c14] : memref<61xf32, #tpu.memory_space<smem>>
    %73 = vector.broadcast %72 : f32 to vector<1x128xf32>
    %74 = arith.addf %71, %73 : vector<1x128xf32>
    %cst_14 = arith.constant 0.000000e+00 : f32
    %75 = vector.broadcast %cst_14 : f32 to vector<1x128xf32>
    %76 = arith.maximumf %74, %75 : vector<1x128xf32>
    %c52 = arith.constant 52 : index
    %77 = memref.load %arg1[%c52] : memref<61xf32, #tpu.memory_space<smem>>
    %78 = vector.broadcast %77 : f32 to vector<1x128xf32>
    %79 = arith.mulf %78, %76 : vector<1x128xf32>
    %80 = arith.addf %56, %79 : vector<1x128xf32>
    %c15 = arith.constant 15 : index
    %81 = memref.load %arg1[%c15] : memref<61xf32, #tpu.memory_space<smem>>
    %82 = vector.broadcast %81 : f32 to vector<1x128xf32>
    %83 = arith.mulf %82, %1 : vector<1x128xf32>
    %c16 = arith.constant 16 : index
    %84 = memref.load %arg1[%c16] : memref<61xf32, #tpu.memory_space<smem>>
    %85 = vector.broadcast %84 : f32 to vector<1x128xf32>
    %86 = arith.mulf %85, %3 : vector<1x128xf32>
    %87 = arith.addf %83, %86 : vector<1x128xf32>
    %c17 = arith.constant 17 : index
    %88 = memref.load %arg1[%c17] : memref<61xf32, #tpu.memory_space<smem>>
    %89 = vector.broadcast %88 : f32 to vector<1x128xf32>
    %90 = arith.mulf %89, %5 : vector<1x128xf32>
    %91 = arith.addf %87, %90 : vector<1x128xf32>
    %c18 = arith.constant 18 : index
    %92 = memref.load %arg1[%c18] : memref<61xf32, #tpu.memory_space<smem>>
    %93 = vector.broadcast %92 : f32 to vector<1x128xf32>
    %94 = arith.mulf %93, %7 : vector<1x128xf32>
    %95 = arith.addf %91, %94 : vector<1x128xf32>
    %c19 = arith.constant 19 : index
    %96 = memref.load %arg1[%c19] : memref<61xf32, #tpu.memory_space<smem>>
    %97 = vector.broadcast %96 : f32 to vector<1x128xf32>
    %98 = arith.addf %95, %97 : vector<1x128xf32>
    %cst_15 = arith.constant 0.000000e+00 : f32
    %99 = vector.broadcast %cst_15 : f32 to vector<1x128xf32>
    %100 = arith.maximumf %98, %99 : vector<1x128xf32>
    %c53 = arith.constant 53 : index
    %101 = memref.load %arg1[%c53] : memref<61xf32, #tpu.memory_space<smem>>
    %102 = vector.broadcast %101 : f32 to vector<1x128xf32>
    %103 = arith.mulf %102, %100 : vector<1x128xf32>
    %104 = arith.addf %80, %103 : vector<1x128xf32>
    %c20 = arith.constant 20 : index
    %105 = memref.load %arg1[%c20] : memref<61xf32, #tpu.memory_space<smem>>
    %106 = vector.broadcast %105 : f32 to vector<1x128xf32>
    %107 = arith.mulf %106, %1 : vector<1x128xf32>
    %c21 = arith.constant 21 : index
    %108 = memref.load %arg1[%c21] : memref<61xf32, #tpu.memory_space<smem>>
    %109 = vector.broadcast %108 : f32 to vector<1x128xf32>
    %110 = arith.mulf %109, %3 : vector<1x128xf32>
    %111 = arith.addf %107, %110 : vector<1x128xf32>
    %c22 = arith.constant 22 : index
    %112 = memref.load %arg1[%c22] : memref<61xf32, #tpu.memory_space<smem>>
    %113 = vector.broadcast %112 : f32 to vector<1x128xf32>
    %114 = arith.mulf %113, %5 : vector<1x128xf32>
    %115 = arith.addf %111, %114 : vector<1x128xf32>
    %c23 = arith.constant 23 : index
    %116 = memref.load %arg1[%c23] : memref<61xf32, #tpu.memory_space<smem>>
    %117 = vector.broadcast %116 : f32 to vector<1x128xf32>
    %118 = arith.mulf %117, %7 : vector<1x128xf32>
    %119 = arith.addf %115, %118 : vector<1x128xf32>
    %c24 = arith.constant 24 : index
    %120 = memref.load %arg1[%c24] : memref<61xf32, #tpu.memory_space<smem>>
    %121 = vector.broadcast %120 : f32 to vector<1x128xf32>
    %122 = arith.addf %119, %121 : vector<1x128xf32>
    %cst_16 = arith.constant 0.000000e+00 : f32
    %123 = vector.broadcast %cst_16 : f32 to vector<1x128xf32>
    %124 = arith.maximumf %122, %123 : vector<1x128xf32>
    %c54 = arith.constant 54 : index
    %125 = memref.load %arg1[%c54] : memref<61xf32, #tpu.memory_space<smem>>
    %126 = vector.broadcast %125 : f32 to vector<1x128xf32>
    %127 = arith.mulf %126, %124 : vector<1x128xf32>
    %128 = arith.addf %104, %127 : vector<1x128xf32>
    %c25 = arith.constant 25 : index
    %129 = memref.load %arg1[%c25] : memref<61xf32, #tpu.memory_space<smem>>
    %130 = vector.broadcast %129 : f32 to vector<1x128xf32>
    %131 = arith.mulf %130, %1 : vector<1x128xf32>
    %c26 = arith.constant 26 : index
    %132 = memref.load %arg1[%c26] : memref<61xf32, #tpu.memory_space<smem>>
    %133 = vector.broadcast %132 : f32 to vector<1x128xf32>
    %134 = arith.mulf %133, %3 : vector<1x128xf32>
    %135 = arith.addf %131, %134 : vector<1x128xf32>
    %c27 = arith.constant 27 : index
    %136 = memref.load %arg1[%c27] : memref<61xf32, #tpu.memory_space<smem>>
    %137 = vector.broadcast %136 : f32 to vector<1x128xf32>
    %138 = arith.mulf %137, %5 : vector<1x128xf32>
    %139 = arith.addf %135, %138 : vector<1x128xf32>
    %c28 = arith.constant 28 : index
    %140 = memref.load %arg1[%c28] : memref<61xf32, #tpu.memory_space<smem>>
    %141 = vector.broadcast %140 : f32 to vector<1x128xf32>
    %142 = arith.mulf %141, %7 : vector<1x128xf32>
    %143 = arith.addf %139, %142 : vector<1x128xf32>
    %c29 = arith.constant 29 : index
    %144 = memref.load %arg1[%c29] : memref<61xf32, #tpu.memory_space<smem>>
    %145 = vector.broadcast %144 : f32 to vector<1x128xf32>
    %146 = arith.addf %143, %145 : vector<1x128xf32>
    %cst_17 = arith.constant 0.000000e+00 : f32
    %147 = vector.broadcast %cst_17 : f32 to vector<1x128xf32>
    %148 = arith.maximumf %146, %147 : vector<1x128xf32>
    %c55 = arith.constant 55 : index
    %149 = memref.load %arg1[%c55] : memref<61xf32, #tpu.memory_space<smem>>
    %150 = vector.broadcast %149 : f32 to vector<1x128xf32>
    %151 = arith.mulf %150, %148 : vector<1x128xf32>
    %152 = arith.addf %128, %151 : vector<1x128xf32>
    %c30 = arith.constant 30 : index
    %153 = memref.load %arg1[%c30] : memref<61xf32, #tpu.memory_space<smem>>
    %154 = vector.broadcast %153 : f32 to vector<1x128xf32>
    %155 = arith.mulf %154, %1 : vector<1x128xf32>
    %c31 = arith.constant 31 : index
    %156 = memref.load %arg1[%c31] : memref<61xf32, #tpu.memory_space<smem>>
    %157 = vector.broadcast %156 : f32 to vector<1x128xf32>
    %158 = arith.mulf %157, %3 : vector<1x128xf32>
    %159 = arith.addf %155, %158 : vector<1x128xf32>
    %c32 = arith.constant 32 : index
    %160 = memref.load %arg1[%c32] : memref<61xf32, #tpu.memory_space<smem>>
    %161 = vector.broadcast %160 : f32 to vector<1x128xf32>
    %162 = arith.mulf %161, %5 : vector<1x128xf32>
    %163 = arith.addf %159, %162 : vector<1x128xf32>
    %c33 = arith.constant 33 : index
    %164 = memref.load %arg1[%c33] : memref<61xf32, #tpu.memory_space<smem>>
    %165 = vector.broadcast %164 : f32 to vector<1x128xf32>
    %166 = arith.mulf %165, %7 : vector<1x128xf32>
    %167 = arith.addf %163, %166 : vector<1x128xf32>
    %c34 = arith.constant 34 : index
    %168 = memref.load %arg1[%c34] : memref<61xf32, #tpu.memory_space<smem>>
    %169 = vector.broadcast %168 : f32 to vector<1x128xf32>
    %170 = arith.addf %167, %169 : vector<1x128xf32>
    %cst_18 = arith.constant 0.000000e+00 : f32
    %171 = vector.broadcast %cst_18 : f32 to vector<1x128xf32>
    %172 = arith.maximumf %170, %171 : vector<1x128xf32>
    %c56 = arith.constant 56 : index
    %173 = memref.load %arg1[%c56] : memref<61xf32, #tpu.memory_space<smem>>
    %174 = vector.broadcast %173 : f32 to vector<1x128xf32>
    %175 = arith.mulf %174, %172 : vector<1x128xf32>
    %176 = arith.addf %152, %175 : vector<1x128xf32>
    %c35 = arith.constant 35 : index
    %177 = memref.load %arg1[%c35] : memref<61xf32, #tpu.memory_space<smem>>
    %178 = vector.broadcast %177 : f32 to vector<1x128xf32>
    %179 = arith.mulf %178, %1 : vector<1x128xf32>
    %c36 = arith.constant 36 : index
    %180 = memref.load %arg1[%c36] : memref<61xf32, #tpu.memory_space<smem>>
    %181 = vector.broadcast %180 : f32 to vector<1x128xf32>
    %182 = arith.mulf %181, %3 : vector<1x128xf32>
    %183 = arith.addf %179, %182 : vector<1x128xf32>
    %c37 = arith.constant 37 : index
    %184 = memref.load %arg1[%c37] : memref<61xf32, #tpu.memory_space<smem>>
    %185 = vector.broadcast %184 : f32 to vector<1x128xf32>
    %186 = arith.mulf %185, %5 : vector<1x128xf32>
    %187 = arith.addf %183, %186 : vector<1x128xf32>
    %c38 = arith.constant 38 : index
    %188 = memref.load %arg1[%c38] : memref<61xf32, #tpu.memory_space<smem>>
    %189 = vector.broadcast %188 : f32 to vector<1x128xf32>
    %190 = arith.mulf %189, %7 : vector<1x128xf32>
    %191 = arith.addf %187, %190 : vector<1x128xf32>
    %c39 = arith.constant 39 : index
    %192 = memref.load %arg1[%c39] : memref<61xf32, #tpu.memory_space<smem>>
    %193 = vector.broadcast %192 : f32 to vector<1x128xf32>
    %194 = arith.addf %191, %193 : vector<1x128xf32>
    %cst_19 = arith.constant 0.000000e+00 : f32
    %195 = vector.broadcast %cst_19 : f32 to vector<1x128xf32>
    %196 = arith.maximumf %194, %195 : vector<1x128xf32>
    %c57 = arith.constant 57 : index
    %197 = memref.load %arg1[%c57] : memref<61xf32, #tpu.memory_space<smem>>
    %198 = vector.broadcast %197 : f32 to vector<1x128xf32>
    %199 = arith.mulf %198, %196 : vector<1x128xf32>
    %200 = arith.addf %176, %199 : vector<1x128xf32>
    %c40 = arith.constant 40 : index
    %201 = memref.load %arg1[%c40] : memref<61xf32, #tpu.memory_space<smem>>
    %202 = vector.broadcast %201 : f32 to vector<1x128xf32>
    %203 = arith.mulf %202, %1 : vector<1x128xf32>
    %c41 = arith.constant 41 : index
    %204 = memref.load %arg1[%c41] : memref<61xf32, #tpu.memory_space<smem>>
    %205 = vector.broadcast %204 : f32 to vector<1x128xf32>
    %206 = arith.mulf %205, %3 : vector<1x128xf32>
    %207 = arith.addf %203, %206 : vector<1x128xf32>
    %c42 = arith.constant 42 : index
    %208 = memref.load %arg1[%c42] : memref<61xf32, #tpu.memory_space<smem>>
    %209 = vector.broadcast %208 : f32 to vector<1x128xf32>
    %210 = arith.mulf %209, %5 : vector<1x128xf32>
    %211 = arith.addf %207, %210 : vector<1x128xf32>
    %c43 = arith.constant 43 : index
    %212 = memref.load %arg1[%c43] : memref<61xf32, #tpu.memory_space<smem>>
    %213 = vector.broadcast %212 : f32 to vector<1x128xf32>
    %214 = arith.mulf %213, %7 : vector<1x128xf32>
    %215 = arith.addf %211, %214 : vector<1x128xf32>
    %c44 = arith.constant 44 : index
    %216 = memref.load %arg1[%c44] : memref<61xf32, #tpu.memory_space<smem>>
    %217 = vector.broadcast %216 : f32 to vector<1x128xf32>
    %218 = arith.addf %215, %217 : vector<1x128xf32>
    %cst_20 = arith.constant 0.000000e+00 : f32
    %219 = vector.broadcast %cst_20 : f32 to vector<1x128xf32>
    %220 = arith.maximumf %218, %219 : vector<1x128xf32>
    %c58 = arith.constant 58 : index
    %221 = memref.load %arg1[%c58] : memref<61xf32, #tpu.memory_space<smem>>
    %222 = vector.broadcast %221 : f32 to vector<1x128xf32>
    %223 = arith.mulf %222, %220 : vector<1x128xf32>
    %224 = arith.addf %200, %223 : vector<1x128xf32>
    %c45 = arith.constant 45 : index
    %225 = memref.load %arg1[%c45] : memref<61xf32, #tpu.memory_space<smem>>
    %226 = vector.broadcast %225 : f32 to vector<1x128xf32>
    %227 = arith.mulf %226, %1 : vector<1x128xf32>
    %c46 = arith.constant 46 : index
    %228 = memref.load %arg1[%c46] : memref<61xf32, #tpu.memory_space<smem>>
    %229 = vector.broadcast %228 : f32 to vector<1x128xf32>
    %230 = arith.mulf %229, %3 : vector<1x128xf32>
    %231 = arith.addf %227, %230 : vector<1x128xf32>
    %c47 = arith.constant 47 : index
    %232 = memref.load %arg1[%c47] : memref<61xf32, #tpu.memory_space<smem>>
    %233 = vector.broadcast %232 : f32 to vector<1x128xf32>
    %234 = arith.mulf %233, %5 : vector<1x128xf32>
    %235 = arith.addf %231, %234 : vector<1x128xf32>
    %c48 = arith.constant 48 : index
    %236 = memref.load %arg1[%c48] : memref<61xf32, #tpu.memory_space<smem>>
    %237 = vector.broadcast %236 : f32 to vector<1x128xf32>
    %238 = arith.mulf %237, %7 : vector<1x128xf32>
    %239 = arith.addf %235, %238 : vector<1x128xf32>
    %c49 = arith.constant 49 : index
    %240 = memref.load %arg1[%c49] : memref<61xf32, #tpu.memory_space<smem>>
    %241 = vector.broadcast %240 : f32 to vector<1x128xf32>
    %242 = arith.addf %239, %241 : vector<1x128xf32>
    %cst_21 = arith.constant 0.000000e+00 : f32
    %243 = vector.broadcast %cst_21 : f32 to vector<1x128xf32>
    %244 = arith.maximumf %242, %243 : vector<1x128xf32>
    %c59 = arith.constant 59 : index
    %245 = memref.load %arg1[%c59] : memref<61xf32, #tpu.memory_space<smem>>
    %246 = vector.broadcast %245 : f32 to vector<1x128xf32>
    %247 = arith.mulf %246, %244 : vector<1x128xf32>
    %248 = arith.addf %224, %247 : vector<1x128xf32>
    %c60 = arith.constant 60 : index
    %249 = memref.load %arg1[%c60] : memref<61xf32, #tpu.memory_space<smem>>
    %250 = vector.broadcast %249 : f32 to vector<1x128xf32>
    %251 = arith.addf %248, %250 : vector<1x128xf32>
    %cst_22 = arith.constant 0.000000e+00 : f32
    %252 = vector.broadcast %cst_22 : f32 to vector<1x128xf32>
    %253 = arith.subf %252, %251 : vector<1x128xf32>
    %254 = math.exp %253 : vector<1x128xf32>
    %cst_23 = arith.constant 1.000000e+00 : f32
    %255 = vector.broadcast %cst_23 : f32 to vector<1x128xf32>
    %256 = arith.addf %255, %254 : vector<1x128xf32>
    %cst_24 = arith.constant 1.000000e+00 : f32
    %257 = vector.broadcast %cst_24 : f32 to vector<1x128xf32>
    %258 = arith.divf %257, %256 : vector<1x128xf32>
    %c0_25 = arith.constant 0 : index
    %c0_26 = arith.constant 0 : index
    %c0_27 = arith.constant 0 : index
    %259 = vector.load %arg3[%c0_25, %c0_26, %c0_27] : memref<2x1x128xf32, #tpu.memory_space<vmem>>, vector<1x1x128xf32>
    %260 = vector.shape_cast %259 : vector<1x1x128xf32> to vector<1x128xf32>
    %261 = vector.shape_cast %258 : vector<1x128xf32> to vector<1x1x128xf32>
    tpu.vector_store %arg3[%c0_25, %c0_26, %c0_27], %261 {strides = array<i32>} : memref<2x1x128xf32, #tpu.memory_space<vmem>>, vector<1x1x128xf32>,
    %cst_28 = arith.constant 1.000000e+00 : f32
    %262 = vector.broadcast %cst_28 : f32 to vector<1x128xf32>
    %263 = arith.subf %262, %258 : vector<1x128xf32>
    %c1_29 = arith.constant 1 : index
    %c0_30 = arith.constant 0 : index
    %c0_31 = arith.constant 0 : index
    %264 = vector.load %arg3[%c1_29, %c0_30, %c0_31] : memref<2x1x128xf32, #tpu.memory_space<vmem>>, vector<1x1x128xf32>
    %265 = vector.shape_cast %264 : vector<1x1x128xf32> to vector<1x128xf32>
    %266 = vector.shape_cast %263 : vector<1x128xf32> to vector<1x1x128xf32>
    tpu.vector_store %arg3[%c1_29, %c0_30, %c0_31], %266 {strides = array<i32>} : memref<2x1x128xf32, #tpu.memory_space<vmem>>, vector<1x1x128xf32>,
    return
  }
  func.func @transform_0(%arg0: i32) -> i32 {
    %c0_i32 = arith.constant 0 : i32
    %c0_i32_0 = arith.constant 0 : i32
    return %c0_i32 : i32
  }
  func.func @transform_1(%arg0: i32) -> (i32, i32, i32) {
    %c0_i32 = arith.constant 0 : i32
    %c0_i32_0 = arith.constant 0 : i32
    %c0_i32_1 = arith.constant 0 : i32
    return %c0_i32, %arg0, %c0_i32_0 : i32, i32, i32
  }
  func.func @transform_2(%arg0: i32) -> (i32, i32, i32) {
    %c0_i32 = arith.constant 0 : i32
    %c0_i32_0 = arith.constant 0 : i32
    %c0_i32_1 = arith.constant 0 : i32
    return %c0_i32, %arg0, %c0_i32_0 : i32, i32, i32
  }
}

</mosaic_0001>

<bundles_post_ra>
// kernel: tpu_custom_call.1
= control target key start
LH: loop header
LB: loop body
LE: loop exit
PB: predicated region body
PF: predicated region fallthrough
CT: control target
= control target key end

     0   :  { %7 = vsyncpa [#allocation5], 0  ;;  %s703_s0 = inlined_call_operand.hbm [shape: f32[61], index: 0, kind: input, shape index: {}]   ;;  %s704_s1 = inlined_call_operand.hbm [shape: f32[4,1,128], index: 1, kind: input, shape index: {}]   ;;  %s705_s2 = inlined_call_operand.hbm [shape: f32[2,1,128], index: 2, kind: output, shape index: {}]  }
   0x1   :  { %8 = vsyncpa [#allocation3], 0 }
   0x2   :  { %9 = vsyncpa [#allocation4], 0  ;;  %s374_s11 = scalar_lea.hbm %s703_s0, 16 }
   0x3   :  { %p375_p0 = scmp.ne.s32.totalorder %s703_s0, %s374_s11  ;;  %p378_p1 = scmp.lt.u32.totalorder %s374_s11, %s703_s0 }
   0x5   :  { %p380_p2 = pnand %p378_p1, %p375_p0 }
   0x7   :  { %383 = shalt.err (!%p380_p2)
}
   0x8   :  { %s434_s16 = smov [#allocation2]   ;;  %s435_s19 = smov [#allocation6]  }
   0x9   :  { %17 = dma.hbm_to_smem %s703_s0, 16, %s434_s16, [#allocation5]  }
   0xa   :  { %s23_s20 = sshll.u32 %s435_s19, 4  ;;  %s384_s23 = scalar_lea.hbm %s704_s1, 64  ;;  %s24_s20 = int_to_ptr.vmem [resolvable:$true] %s23_s20 }
   0xb   :  { %p385_p3 = scmp.ne.s32.totalorder %s704_s1, %s384_s23  ;;  %p388_p4 = scmp.lt.u32.totalorder %s384_s23, %s704_s1 }
   0xd   :  { %p390_p5 = pnand %p388_p4, %p385_p3 }
   0xf   :  { %393 = shalt.err (!%p390_p5)
}
  0x10   :  { %s394_s28 = scalar_lea.vmem %s24_s20, 64  ;;  %p399_p7 = scmp.lt.s32.totalorder %s24_s20, %s24_s20 }
  0x11   :  { %p395_p6 = scmp.ne.s32.totalorder %s24_s20, %s394_s28  ;;  %p400_p8 = scmp.lt.s32.totalorder %s394_s28, %s394_s28 }
  0x13   :  { %p401_p9 = por %p400_p8, %p399_p7 }
  0x15   :  { %p402_p10 = pnand %p401_p9, %p395_p6 }
  0x17   :  { %405 = shalt.err (!%p402_p10)
}
  0x18   :  { %s436_s0 = smov 16   ;;  %s437_s29 = smov 1  }
  0x19   :  { %29 = dma.hbm_to_vmem [thread:$0]  %s704_s1, 64, %s24_s20, [#allocation3], %s436_s0, %s436_s0, %s437_s29  }
  0x1a   :  { %428 = dma.done.wait [#allocation5], 16  }
  0x1b   :  { %429 = vsyncadd [#allocation5], 4294967280 }
  0x1c   :  { %430 = dma.done.wait [#allocation3], 64  }
  0x1d   :  { %431 = vsyncadd [#allocation3], 4294967232 }
  0x1e   :  { %36 = sfence }
  0x1f   :  { %s44_s4 = sld [smem:[#allocation2]]  ;;  %s305_s5 = sld [smem:[#allocation2 + $0x1]]  ;;  %v485_v0 = vld [vmem:[#allocation6] sm:$0x1]  ;;  %v487_v1 = vld [vmem:[#allocation6 + $0x1] sm:$0x1] }
  0x20   :  { %s306_s6 = sld [smem:[#allocation2 + $0x2]]  ;;  %s307_s7 = sld [smem:[#allocation2 + $0x3]]  ;;  %v493_v2 = vld [vmem:[#allocation6 + $0x2] sm:$0x1]  ;;  %v499_v3 = vld [vmem:[#allocation6 + $0x3] sm:$0x1] }
  0x21   :  { %s481_s8 = sld [smem:[#allocation2 + $0x4]]  ;;  %s483_s9 = sld [smem:[#allocation2 + $0x32]] }
  0x22   :  { %s310_s10 = sld [smem:[#allocation2 + $0x5]]  ;;  %s311_s11 = sld [smem:[#allocation2 + $0x6]] }
  0x23   :  { %s489_s1 = sld [smem:[#allocation2 + $0x7]]  ;;  %s491_s12 = sld [smem:[#allocation2 + $0x8]] }
  0x24   :  { %s495_s13 = sld [smem:[#allocation2 + $0x9]]  ;;  %s497_s14 = sld [smem:[#allocation2 + $0x33]] }
  0x25   :  { %v45_v4 = vstv %s44_s4  ;;  %v48_v5 = vstv %s305_s5  ;;  %s501_s15 = sld [smem:[#allocation2 + $0xa]]  ;;  %s503_s16 = sld [smem:[#allocation2 + $0xb]] }
  0x26   :  { %v46_v6 = vmul.f32 %v45_v4, %v485_v0  ;;  %v49_v7 = vmul.f32 %v48_v5, %v487_v1  ;;  %v52_v8 = vstv %s306_s6  ;;  %v56_v9 = vstv %s307_s7  ;;  %s507_s17 = sld [smem:[#allocation2 + $0xc]]  ;;  %s509_s18 = sld [smem:[#allocation2 + $0xd]] }
  0x27   :  { %v53_v10 = vmul.f32 %v52_v8, %v493_v2  ;;  %s512_s19 = sld [smem:[#allocation2 + $0xe]]  ;;  %v57_v12 = vmul.f32 %v56_v9, %v499_v3  ;;  %s515_s20 = sld [smem:[#allocation2 + $0xf]]  ;;  %v60_v20 = vstv %s481_s8  ;;  %v64_v21 = vstv %s483_s9 }
  0x28   :  { %v50_v11 = vadd.f32 %v49_v7, %v46_v6  ;;  %v68_v13 = vstv %s310_s10  ;;  %v71_v14 = vstv %s311_s11  ;;  %s517_s21 = sld [smem:[#allocation2 + $0x10]]  ;;  %s523_s22 = sld [smem:[#allocation2 + $0x11]] }
  0x29   :  { %v69_v15 = vmul.f32 %v68_v13, %v485_v0  ;;  %v72_v16 = vmul.f32 %v71_v14, %v487_v1  ;;  %v75_v17 = vstv %s489_s1  ;;  %v79_v18 = vstv %s491_s12  ;;  %s525_s23 = sld [smem:[#allocation2 + $0x12]]  ;;  %s530_s24 = sld [smem:[#allocation2 + $0x34]] }
  0x2a   :  { %v54_v19 = vadd.f32 %v53_v10, %v50_v11  ;;  %v76_v22 = vmul.f32 %v75_v17, %v493_v2  ;;  %v80_v24 = vmul.f32 %v79_v18, %v499_v3  ;;  %s535_s25 = sld [smem:[#allocation2 + $0x14]]  ;;  %s537_s26 = sld [smem:[#allocation2 + $0x15]]  ;;  %v83_v32 = vstv %s495_s13 }
  0x2b   :  { %v73_v23 = vadd.f32 %v72_v16, %v69_v15  ;;  %v91_v25 = vstv %s501_s15  ;;  %v94_v26 = vstv %s503_s16  ;;  %s542_s27 = sld [smem:[#allocation2 + $0x13]]  ;;  %s547_s28 = sld [smem:[#allocation2 + $0x16]]  ;;  %v87_v36 = vstv %s497_s14 }
  0x2c   :  { %v58_v27 = vadd.f32 %v57_v12, %v54_v19  ;;  %v92_v28 = vmul.f32 %v91_v25, %v485_v0  ;;  %v95_v29 = vmul.f32 %v94_v26, %v487_v1  ;;  %v98_v30 = vstv %s507_s17  ;;  %s549_s30 = sld [smem:[#allocation2 + $0x17]]  ;;  %s556_s3 = sld [smem:[#allocation2 + $0x35]] }
  0x2d   :  { %v77_v31 = vadd.f32 %v76_v22, %v73_v23  ;;  %v99_v33 = vmul.f32 %v98_v30, %v493_v2  ;;  %v102_v34 = vstv %s509_s18  ;;  %v114_v40 = vstv %s515_s20  ;;  %s558_s4 = sld [smem:[#allocation2 + $0x19]]  ;;  %s562_s5 = sld [smem:[#allocation2 + $0x18]] }
  0x2e   :  { %v61_v35 = vadd.f32 %v60_v20, %v58_v27  ;;  %v96_v37 = vadd.f32 %v95_v29, %v92_v28  ;;  %v103_v38 = vmul.f32 %v102_v34, %v499_v3  ;;  %v117_v41 = vstv %s517_s21  ;;  %s564_s6 = sld [smem:[#allocation2 + $0x1a]]  ;;  %s569_s7 = sld [smem:[#allocation2 + $0x1b]] }
  0x2f   :  { %v81_v39 = vadd.f32 %v80_v24, %v77_v31  ;;  %v121_v42 = vstv %s523_s22  ;;  %v115_v45 = vmul.f32 %v114_v40, %v485_v0  ;;  %v118_v46 = vmul.f32 %v117_v41, %v487_v1  ;;  %s571_s8 = sld [smem:[#allocation2 + $0x1c]]  ;;  %s577_s9 = sld [smem:[#allocation2 + $0x1e]] }
  0x30   :  { %v62_v43 = vmax.f32 %v61_v35, 0.0  ;;  %v100_v44 = vadd.f32 %v99_v33, %v96_v37  ;;  %v106_v48 = vstv %s512_s19  ;;  %v122_v49 = vmul.f32 %v121_v42, %v493_v2  ;;  %s581_s10 = sld [smem:[#allocation2 + $0x36]]  ;;  %s583_s11 = sld [smem:[#allocation2 + $0x1f]] }
  0x31   :  { %v84_v47 = vadd.f32 %v83_v32, %v81_v39  ;;  %v125_v50 = vstv %s525_s23  ;;  %v110_v52 = vstv %s530_s24  ;;  %v119_v53 = vadd.f32 %v118_v46, %v115_v45  ;;  %s588_s1 = sld [smem:[#allocation2 + $0x20]]  ;;  %s590_s12 = sld [smem:[#allocation2 + $0x21]] }
  0x32   :  { %v104_v51 = vadd.f32 %v103_v38, %v100_v44  ;;  %v126_v54 = vmul.f32 %v125_v50, %v499_v3  ;;  %v65_v55 = vmul.f32 %v64_v21, %v62_v43  ;;  %v137_v57 = vstv %s535_s25  ;;  %s593_s13 = sld [smem:[#allocation2 + $0x1d]]  ;;  %s598_s14 = sld [smem:[#allocation2 + $0x23]] }
  0x33   :  { %v85_v56 = vmax.f32 %v84_v47, 0.0  ;;  %v140_v58 = vstv %s537_s26  ;;  %v123_v60 = vadd.f32 %v122_v49, %v119_v53  ;;  %v138_v61 = vmul.f32 %v137_v57, %v485_v0  ;;  %s601_s15 = sld [smem:[#allocation2 + $0x37]]  ;;  %s603_s16 = sld [smem:[#allocation2 + $0x24]] }
  0x34   :  { %v107_v59 = vadd.f32 %v106_v48, %v104_v51  ;;  %v141_v62 = vmul.f32 %v140_v58, %v487_v1  ;;  %v129_v4 = vstv %s542_s27  ;;  %v144_v5 = vstv %s547_s28  ;;  %s609_s17 = sld [smem:[#allocation2 + $0x25]]  ;;  %s611_s18 = sld [smem:[#allocation2 + $0x26]] }
  0x35   :  { %v88_v63 = vmul.f32 %v87_v36, %v85_v56  ;;  %v148_v6 = vstv %s549_s30  ;;  %v127_v8 = vadd.f32 %v126_v54, %v123_v60  ;;  %v145_v10 = vmul.f32 %v144_v5, %v493_v2  ;;  %s614_s19 = sld [smem:[#allocation2 + $0x22]]  ;;  %s619_s20 = sld [smem:[#allocation2 + $0x28]] }
  0x36   :  { %v108_v7 = vmax.f32 %v107_v59, 0.0  ;;  %v142_v9 = vadd.f32 %v141_v62, %v138_v61  ;;  %v133_v12 = vstv %s556_s3  ;;  %v149_v13 = vmul.f32 %v148_v6, %v499_v3  ;;  %s622_s21 = sld [smem:[#allocation2 + $0x38]]  ;;  %s624_s22 = sld [smem:[#allocation2 + $0x29]] }
  0x37   :  { %v89_v11 = vadd.f32 %v88_v63, %v65_v55  ;;  %v160_v14 = vstv %s558_s4  ;;  %v130_v16 = vadd.f32 %v129_v4, %v127_v8  ;;  %v152_v19 = vstv %s562_s5  ;;  %s630_s23 = sld [smem:[#allocation2 + $0x2a]]  ;;  %s632_s24 = sld [smem:[#allocation2 + $0x2b]] }
  0x38   :  { %v111_v15 = vmul.f32 %v110_v52, %v108_v7  ;;  %v146_v17 = vadd.f32 %v145_v10, %v142_v9  ;;  %v161_v18 = vmul.f32 %v160_v14, %v485_v0  ;;  %v163_v20 = vstv %s564_s6  ;;  %s639_s25 = sld [smem:[#allocation2 + $0x27]]  ;;  %s641_s26 = sld [smem:[#allocation2 + $0x2d]] }
  0x39   :  { %v167_v21 = vstv %s569_s7  ;;  %v171_v22 = vstv %s571_s8  ;;  %v131_v23 = vmax.f32 %v130_v16, 0.0  ;;  %v164_v25 = vmul.f32 %v163_v20, %v487_v1  ;;  %s644_s27 = sld [smem:[#allocation2 + $0x2e]]  ;;  %s650_s28 = sld [smem:[#allocation2 + $0x2f]] }
  0x3a   :  { %v150_v24 = vadd.f32 %v149_v13, %v146_v17  ;;  %v112_v26 = vadd.f32 %v111_v15, %v89_v11  ;;  %v168_v27 = vmul.f32 %v167_v21, %v493_v2  ;;  %v172_v28 = vmul.f32 %v171_v22, %v499_v3  ;;  %s652_s30 = sld [smem:[#allocation2 + $0x30]]  ;;  %s658_s3 = sld [smem:[#allocation2 + $0x39]] }
  0x3b   :  { %v183_v29 = vstv %s577_s9  ;;  %v134_v30 = vmul.f32 %v133_v12, %v131_v23  ;;  %v165_v32 = vadd.f32 %v164_v25, %v161_v18  ;;  %v156_v34 = vstv %s581_s10  ;;  %s661_s4 = sld [smem:[#allocation2 + $0x2c]]  ;;  %s672_s5 = sld [smem:[#allocation2 + $0x3a]] }
  0x3c   :  { %v153_v31 = vadd.f32 %v152_v19, %v150_v24  ;;  %v184_v33 = vmul.f32 %v183_v29, %v485_v0  ;;  %v186_v35 = vstv %s583_s11  ;;  %v190_v36 = vstv %s588_s1  ;;  %s675_s6 = sld [smem:[#allocation2 + $0x31]]  ;;  %s363_s7 = sld [smem:[#allocation2 + $0x3b]] }
  0x3d   :  { %v194_v37 = vstv %s590_s12  ;;  %v169_v39 = vadd.f32 %v168_v27, %v165_v32  ;;  %v175_v40 = vstv %s593_s13  ;;  %v187_v41 = vmul.f32 %v186_v35, %v487_v1  ;;  %s364_s8 = sld [smem:[#allocation2 + $0x3c]]  ;;  %s438_s9 = smov [#allocation7]  }
  0x3e   :  { %v154_v38 = vmax.f32 %v153_v31, 0.0  ;;  %v135_v42 = vadd.f32 %v134_v30, %v112_v26  ;;  %v191_v43 = vmul.f32 %v190_v36, %v493_v2  ;;  %v195_v44 = vmul.f32 %v194_v37, %v499_v3  ;;  %s292_s10 = sshll.u32 %s438_s9, 4  ;;  %s293_s10 = int_to_ptr.vmem [resolvable:$true] %s292_s10 }
  0x3f   :  { %v206_v45 = vstv %s598_s14  ;;  %v173_v47 = vadd.f32 %v172_v28, %v169_v39  ;;  %v188_v48 = vadd.f32 %v187_v41, %v184_v33  ;;  %v179_v50 = vstv %s601_s15  ;;  %s406_s11 = scalar_lea.vmem %s293_s10, 32  ;;  %p411_p12 = scmp.lt.s32.totalorder %s293_s10, %s293_s10 }
  0x40   :  { %v157_v46 = vmul.f32 %v156_v34, %v154_v38  ;;  %v207_v49 = vmul.f32 %v206_v45, %v485_v0  ;;  %v209_v51 = vstv %s603_s16  ;;  %v213_v52 = vstv %s609_s17  ;;  %p407_p11 = scmp.ne.s32.totalorder %s293_s10, %s406_s11  ;;  %p412_p13 = scmp.lt.s32.totalorder %s406_s11, %s406_s11 }
  0x41   :  { %v217_v53 = vstv %s611_s18  ;;  %v176_v54 = vadd.f32 %v175_v40, %v173_v47  ;;  %v192_v55 = vadd.f32 %v191_v43, %v188_v48  ;;  %v198_v56 = vstv %s614_s19 }
  0x42   :  { %v210_v57 = vmul.f32 %v209_v51, %v487_v1  ;;  %v158_v58 = vadd.f32 %v157_v46, %v135_v42  ;;  %v214_v59 = vmul.f32 %v213_v52, %v493_v2  ;;  %v218_v60 = vmul.f32 %v217_v53, %v499_v3  ;;  %p413_p0 = por %p412_p13, %p411_p12 }
  0x43   :  { %v229_v61 = vstv %s619_s20  ;;  %v177_v62 = vmax.f32 %v176_v54, 0.0  ;;  %v196_v63 = vadd.f32 %v195_v44, %v192_v55  ;;  %v202_v6 = vstv %s622_s21 }
  0x44   :  { %v211_v4 = vadd.f32 %v210_v57, %v207_v49  ;;  %v230_v5 = vmul.f32 %v229_v61, %v485_v0  ;;  %v232_v7 = vstv %s624_s22  ;;  %v236_v8 = vstv %s630_s23  ;;  %p414_p1 = pnand %p413_p0, %p407_p11 }
  0x45   :  { %v240_v9 = vstv %s632_s24  ;;  %v180_v10 = vmul.f32 %v179_v50, %v177_v62  ;;  %v199_v11 = vadd.f32 %v198_v56, %v196_v63  ;;  %v233_v13 = vmul.f32 %v232_v7, %v487_v1 }
  0x46   :  { %v215_v12 = vadd.f32 %v214_v59, %v211_v4  ;;  %v221_v14 = vstv %s639_s25  ;;  %v237_v15 = vmul.f32 %v236_v8, %v493_v2  ;;  %v241_v16 = vmul.f32 %v240_v9, %v499_v3 }
  0x47   :  { %v252_v17 = vstv %s641_s26  ;;  %v181_v18 = vadd.f32 %v180_v10, %v158_v58  ;;  %v200_v19 = vmax.f32 %v199_v11, 0.0  ;;  %v234_v21 = vadd.f32 %v233_v13, %v230_v5 }
  0x48   :  { %v219_v20 = vadd.f32 %v218_v60, %v215_v12  ;;  %v253_v22 = vmul.f32 %v252_v17, %v485_v0  ;;  %v255_v23 = vstv %s644_s27  ;;  %v259_v24 = vstv %s650_s28 }
  0x49   :  { %v263_v25 = vstv %s652_s30  ;;  %v203_v26 = vmul.f32 %v202_v6, %v200_v19  ;;  %v238_v28 = vadd.f32 %v237_v15, %v234_v21  ;;  %v256_v29 = vmul.f32 %v255_v23, %v487_v1 }
  0x4a   :  { %v222_v27 = vadd.f32 %v221_v14, %v219_v20  ;;  %v225_v30 = vstv %s658_s3  ;;  %v244_v31 = vstv %s661_s4  ;;  %v260_v32 = vmul.f32 %v259_v24, %v493_v2 }
  0x4b   :  { %v264_v33 = vmul.f32 %v263_v25, %v499_v3  ;;  %v204_v34 = vadd.f32 %v203_v26, %v181_v18  ;;  %v242_v0 = vadd.f32 %v241_v16, %v238_v28  ;;  %v257_v36 = vadd.f32 %v256_v29, %v253_v22 }
  0x4c   :  { %v223_v35 = vmax.f32 %v222_v27, 0.0  ;;  %v248_v40 = vstv %s672_s5  ;;  %v267_v41 = vstv %s675_s6  ;;  %v271_v46 = vstv %s363_s7 }
  0x4d   :  { %v245_v38 = vadd.f32 %v244_v31, %v242_v0  ;;  %v261_v39 = vadd.f32 %v260_v32, %v257_v36  ;;  %v275_v48 = vstv %s364_s8 }
  0x4e   :  { %v226_v37 = vmul.f32 %v225_v30, %v223_v35 }
  0x4f   :  { %v246_v43 = vmax.f32 %v245_v38, 0.0  ;;  %v265_v1 = vadd.f32 %v264_v33, %v261_v39 }
  0x50   :  { %v227_v42 = vadd.f32 %v226_v37, %v204_v34 }
  0x51   :  { %v249_v44 = vmul.f32 %v248_v40, %v246_v43  ;;  %v268_v45 = vadd.f32 %v267_v41, %v265_v1 }
  0x53   :  { %v250_v2 = vadd.f32 %v249_v44, %v227_v42  ;;  %v269_v47 = vmax.f32 %v268_v45, 0.0 }
  0x55   :  { %v272_v3 = vmul.f32 %v271_v46, %v269_v47 }
  0x57   :  { %v273_v49 = vadd.f32 %v272_v3, %v250_v2 }
  0x59   :  { %v276_v50 = vadd.f32 %v275_v48, %v273_v49 }
  0x5b   :  { %v277_v51 = vsub.f32 0.0, %v276_v50 }
  0x5d   :  { %v278_v52 = vmul.f32 1.442695, %v277_v51 }
  0x5f   :  { %370 = vpow2.f32 %v278_v52 }
  0x69   :  { %v371_v53 = vpop.eup %370 }
  0x6a   :  { %v280_v54 = vadd.f32 1.0, %v371_v53 }
  0x6c   :  { %372 = vrcp.f32 %v280_v54 }
  0x76   :  { %v373_v55 = vpop.eup %372 }
  0x77   :  { %283 = vst [vmem:[#allocation7] sm:$0x1] %v373_v55  ;;  %v284_v56 = vsub.f32 1.0, %v373_v55 }
  0x79   :  { %286 = vst [vmem:[#allocation7 + $0x1] sm:$0x1] %v284_v56 }
  0x7a   :  { %417 = shalt.err (!%p414_p1)
}
  0x7b   :  { %s418_s13 = scalar_lea.hbm %s705_s2, 32 }
  0x7c   :  { %p419_p2 = scmp.ne.s32.totalorder %s705_s2, %s418_s13  ;;  %p422_p3 = scmp.lt.u32.totalorder %s418_s13, %s705_s2 }
  0x7e   :  { %p424_p4 = pnand %p422_p3, %p419_p2 }
  0x80   :  { %427 = shalt.err (!%p424_p4)
}
  0x81   :  { %298 = dma.vmem_to_hbm [thread:$0]  %s293_s10, 32, %s705_s2, [#allocation4], %s436_s0, %s436_s0, %s437_s29  }
  0x82   :  { %432 = dma.done.wait [#allocation4], 32  }
  0x83   :  { %433 = vsyncadd [#allocation4], 4294967264 }
  0x84   :  { %302 = vsyncpa [#allocation3], 1 }
  0x85   :  { %303 = vsyncpa [#allocation4], 1 }
  0x86   :  { %304 = vsyncpa [#allocation5], 1 }

</bundles_post_ra>
